<compile_context>
chip_gen: v7x
topology: tpu7x:2x2x1
jax: 0.10.0
libtpu: 0.0.40
codegen_flags: <defaults>
</compile_context>

<pallas_src>
import functools
import numpy as np

import jax
import jax.numpy as jnp
from jax import lax
from jax.experimental import pallas as pl
from jax.experimental.pallas import tpu as pltpu  # noqa: F401  (kept for TPU-specific knobs)


# ----------------------------------------------------------------------------
# Kernel 1: cosine similarity for the classification head
#   cos_sim(x, y) = (x @ y^T) / (||x|| ||y||^T + 0.01)
# ----------------------------------------------------------------------------
def _cos_sim_kernel(x_ref, y_ref, o_ref):
    x = x_ref[...].astype(jnp.float32)          # (M, D)
    y = y_ref[...].astype(jnp.float32)          # (N, D)
    # x @ y^T without materialising a transpose of y
    num = lax.dot_general(x, y, (((1,), (1,)), ((), ())),
                          preferred_element_type=jnp.float32)     # (M, N)
    xn = jnp.sqrt(jnp.sum(x * x, axis=-1, keepdims=True))         # (M, 1)
    yn = jnp.sqrt(jnp.sum(y * y, axis=-1, keepdims=True))         # (N, 1)
    # VPU broadcast outer product (no MXU push) + EUP approx reciprocal
    den = xn * jnp.transpose(yn) + 0.01                           # (M, N)
    o_ref[...] = num * pl.reciprocal(den, approx=True)


def cos_sim(x, y):
    M, _ = x.shape
    N, _ = y.shape
    return pl.pallas_call(
        _cos_sim_kernel,
        out_shape=jax.ShapeDtypeStruct((M, N), jnp.float32),
    )(x, y)


# ----------------------------------------------------------------------------
# Kernel 2 (fused): frame cosine distances + bidirectional OTAM DP
#
#   inputs are frame-major reordered features:
#     tfr[l*Q + q, :] = target_features[q, l, :]     (L*Q, D)
#     sfr[m*C + c, :] = support_features[c, m, :]    (L*C, D)
#   so the (Q, C) tile of frame distances for DP cell (l, m) is a contiguous
#   static slice  dists[l*Q:(l+1)*Q, m*C:(m+1)*C].
#
#   Both DP directions (dists and dists^T over the frame axes) are packed into
#   one (Q, 2C) tile per cell; all soft-min ops are elementwise so the chains
#   never interact.  Output is the (Q, C) sum of both directions.
# ----------------------------------------------------------------------------
def _frame_otam_kernel(tfr_ref, sfr_ref, o_ref, *, L, Q, C, lbda):
    tf = tfr_ref[...].astype(jnp.float32)       # (L*Q, D)
    sf = sfr_ref[...].astype(jnp.float32)       # (L*C, D)

    # ---- cosine distances (one MXU matmul; denominator on the VPU/EUP) ----
    num = lax.dot_general(tf, sf, (((1,), (1,)), ((), ())),
                          preferred_element_type=jnp.float32)     # (LQ, LC)
    tn = jnp.sqrt(jnp.sum(tf * tf, axis=-1, keepdims=True))       # (LQ, 1)
    sn = jnp.sqrt(jnp.sum(sf * sf, axis=-1, keepdims=True))       # (LC, 1)
    den = tn * jnp.transpose(sn) + 0.01                           # (LQ, LC)
    dists = 1.0 - num * pl.reciprocal(den, approx=True)           # frame distances

    # (Q, C) block for (query frame l, support frame m)
    def blk(l, m):
        return dists[l * Q:(l + 1) * Q, m * C:(m + 1) * C]

    # packed DP cell: [:, :C] forward direction, [:, C:] backward (transposed) direction
    def dcell(l, m):
        return jnp.concatenate([blk(l, m), blk(m, l)], axis=-1)   # (Q, 2C)

    M = L + 2                                    # padded support-frame axis
    zero = jnp.zeros((Q, 2 * C), jnp.float32)
    inv_l = 1.0 / lbda

    def dpad(l, m):                              # padded-dists accessor
        if m == 0 or m == M - 1:
            return zero
        return dcell(l, m - 1)

    # stable soft-mins (shifted form); 2-way uses the |a-b| trick (one exp only)
    def sm2(a, b):
        return jnp.minimum(a, b) - lbda * jnp.log(
            1.0 + jnp.exp(-jnp.abs(a - b) * inv_l))

    def sm3(a, b, c):
        mn = jnp.minimum(jnp.minimum(a, b), c)
        s = (jnp.exp(-(a - mn) * inv_l) + jnp.exp(-(b - mn) * inv_l)
             + jnp.exp(-(c - mn) * inv_l))
        return mn - lbda * jnp.log(s)

    # ---- DP with a rolling pair of rows (keeps ~2*M tiles live) ----
    # TODO(synk): convert to lax.fori_loop with a carried row buffer if L >> 8.
    prev = [zero] * M                            # row 0
    for m in range(1, M):
        prev[m] = dpad(0, m) + prev[m - 1]
    for l in range(1, L):                        # rows 1 .. L-1
        row = [zero] * M
        row[1] = dpad(l, 1) + sm3(prev[0], prev[1], row[0])
        for m in range(2, M - 1):
            row[m] = dpad(l, m) + sm2(prev[m - 1], row[m - 1])
        row[M - 1] = dpad(l, M - 1) + sm3(prev[M - 2], prev[M - 1], row[M - 2])
        prev = row

    res = prev[M - 1]                            # (Q, 2C) packed result
    o_ref[...] = res[:, :C] + res[:, C:]         # fwd + bwd


def frame_otam_dists(target_features, support_features, lbda=0.5):
    """target: (Q, L, D), class-averaged support: (C, L, D) -> (Q, C)."""
    Q, L, D = target_features.shape
    C = support_features.shape[0]
    # frame-major reorder so every DP cell is a contiguous (Q, C) slice
    tfr = jnp.transpose(target_features, (1, 0, 2)).reshape(L * Q, D)
    sfr = jnp.transpose(support_features, (1, 0, 2)).reshape(L * C, D)
    return pl.pallas_call(
        functools.partial(_frame_otam_kernel, L=L, Q=Q, C=C, lbda=lbda),
        out_shape=jax.ShapeDtypeStruct((Q, C), jnp.float32),
    )(tfr, sfr)


# ----------------------------------------------------------------------------
# Kernel 3: one Transformer_v1 layer (context2), whole batch in one block
#   x = MHSA(LN(x), LN(x), LN(x)) + x ;  x = FFN(x) + x
# ----------------------------------------------------------------------------
def _transformer_layer_kernel(x_ref, wq_ref, wk_ref, wv_ref, wo_ref, bo_ref,
                              g_ref, beta_ref, w1_ref, b1_ref, w2_ref, b2_ref,
                              o_ref, *, heads):
    B, N, D = x_ref.shape
    dh = D // heads
    scale = float(dh) ** -0.5

    # weights loaded once for the whole batch (gridless call, single DMA)
    wq, wk, wv, wo = wq_ref[...], wk_ref[...], wv_ref[...], wo_ref[...]
    bo = bo_ref[...]
    gamma, beta = g_ref[...], beta_ref[...]
    w1, b1 = w1_ref[...], b1_ref[...]
    w2, b2 = w2_ref[...], b2_ref[...]

    for b in range(B):                            # small, unrolled item loop
        x = x_ref[b].astype(jnp.float32)          # (N, D)

        # LayerNorm (eps = 1e-5, like nn.LayerNorm)
        mu = jnp.mean(x, axis=-1, keepdims=True)
        var = jnp.mean((x - mu) ** 2, axis=-1, keepdims=True)
        xn = (x - mu) * lax.rsqrt(var + 1e-5) * gamma + beta

        q = jnp.dot(xn, wq, preferred_element_type=jnp.float32)   # (N, D)
        k = jnp.dot(xn, wk, preferred_element_type=jnp.float32)
        v = jnp.dot(xn, wv, preferred_element_type=jnp.float32)

        # heads as the batch dim of a single contraction (no per-head matmul loop)
        qh = jnp.stack([q[:, h * dh:(h + 1) * dh] for h in range(heads)], axis=0)
        kh = jnp.stack([k[:, h * dh:(h + 1) * dh] for h in range(heads)], axis=0)
        vh = jnp.stack([v[:, h * dh:(h + 1) * dh] for h in range(heads)], axis=0)

        s = jnp.einsum('hqd,hkd->hqk', qh, kh,
                       preferred_element_type=jnp.float32) * scale       # (H, N, N)
        s = s - jnp.max(s, axis=-1, keepdims=True)
        p = jnp.exp(s)
        p = p / jnp.sum(p, axis=-1, keepdims=True)
        oh = jnp.einsum('hqk,hkd->hqd', p, vh,
                        preferred_element_type=jnp.float32)              # (H, N, dh)

        attn = jnp.concatenate([oh[h] for h in range(heads)], axis=-1)   # (N, D)
        attn = jnp.dot(attn, wo, preferred_element_type=jnp.float32) + bo

        x1 = x + attn                                                    # residual
        h1 = jnp.dot(x1, w1, preferred_element_type=jnp.float32) + b1
        h1 = jax.nn.gelu(h1, approximate=True)  # TODO(synk): torch uses exact erf GELU
        h2 = jnp.dot(h1, w2, preferred_element_type=jnp.float32) + b2
        o_ref[b] = (x1 + h2).astype(o_ref.dtype)


def transformer_layer(x, p):
    """x: (B, N, D) -> (B, N, D); one pre-norm MHSA + FFN block (depth=1)."""
    B, N, D = x.shape
    weights = [p['wq'], p['wk'], p['wv'], p['wo'], p['bo'],
               p['gamma'], p['beta'], p['w1'], p['b1'], p['w2'], p['b2']]
    # gridless: whole (B, N, D) batch in one block, weights DMAed exactly once
    return pl.pallas_call(
        functools.partial(_transformer_layer_kernel, heads=p['heads']),
        out_shape=jax.ShapeDtypeStruct((B, N, D), jnp.float32),
    )(x, *weights)


# ----------------------------------------------------------------------------
# CNN_OTAM_CLIPFSAR forward (training branch, USE_CLASSIFICATION=True,
# MERGE_BEFORE / SINGLE_DIRECT unset)
# ----------------------------------------------------------------------------
def clipfsar_forward(support_features, target_features, support_labels,
                     support_real_class, text_features_train, ctx_params,
                     scale=1.0, seq_len=8):
    # --- class_text_logits: classification_layer == identity ---
    feat_cls_in = jnp.concatenate([support_features, target_features], axis=0)
    feat_cls = jnp.mean(feat_cls_in, axis=1)                          # (S+Q, D)
    class_text_logits = cos_sim(feat_cls, text_features_train) * scale

    # --- context support = text feature of each support video's real class ---
    real = np.asarray(support_real_class)
    context_support = text_features_train[real][:, None, :]           # (S, 1, D); mid_layer == identity

    # --- temporal context transformer (context2) ---
    target_features = transformer_layer(target_features, ctx_params)               # (Q, L, D)
    support_features = jnp.concatenate([support_features, context_support], axis=1)  # (S, L+1, D)
    support_features = transformer_layer(support_features, ctx_params)[:, :seq_len, :]

    # --- average support videos per class (MERGE_BEFORE not set) ---
    labels_np = np.asarray(support_labels)
    unique_labels = np.unique(labels_np)
    support_features = jnp.stack(
        [jnp.mean(support_features[np.nonzero(labels_np == c)[0]], axis=0)
         for c in unique_labels])                                      # (C, L, D)

    # --- fused frame cosine distances + bidirectional OTAM DP ---
    cum_dists = frame_otam_dists(target_features, support_features, lbda=0.5)  # (Q, C)

    # class_dists: support is already class-averaged & ordered by unique labels,
    # so the final index_select/mean over unique_labels is the identity.
    class_dists = cum_dists
    return {'logits': -class_dists[None],                              # (1, Q, C)
            'class_logits': class_text_logits[None]}                   # (1, S+Q, n_text)


# ----------------------------------------------------------------------------
# Parameter / input construction
# ----------------------------------------------------------------------------
def make_context2_params(key, dim, mlp_dim, heads=8):
    ks = jax.random.split(key, 8)
    s = 0.05
    return {
        'heads': heads,
        'wq': jax.random.normal(ks[0], (dim, dim), jnp.float32) * s,
        'wk': jax.random.normal(ks[1], (dim, dim), jnp.float32) * s,
        'wv': jax.random.normal(ks[2], (dim, dim), jnp.float32) * s,
        'wo': jax.random.normal(ks[3], (dim, dim), jnp.float32) * s,
        'bo': jnp.zeros((1, dim), jnp.float32),
        'gamma': jnp.ones((1, dim), jnp.float32),
        'beta': jnp.zeros((1, dim), jnp.float32),
        'w1': jax.random.normal(ks[4], (dim, mlp_dim), jnp.float32) * s,
        'b1': jnp.zeros((1, mlp_dim), jnp.float32),
        'w2': jax.random.normal(ks[5], (mlp_dim, dim), jnp.float32) * s,
        'b2': jnp.zeros((1, dim), jnp.float32),
    }


if __name__ == "__main__":
    # Small, module-consistent shapes:
    #   2 support videos (2-way / 1-shot), 2 query videos, SEQ_LEN=8, mid_dim=64,
    #   4 training text classes, heads=8 (dim_head = 64 // 8 = 8).
    SEQ_LEN, DIM, MLP_DIM, HEADS = 8, 64, 128, 8
    N_SUPPORT, N_QUERY, N_TEXT = 2, 2, 4

    key = jax.random.PRNGKey(0)
    k_sup, k_tgt, k_txt, k_ctx = jax.random.split(key, 4)

    support_features = jax.random.normal(k_sup, (N_SUPPORT, SEQ_LEN, DIM), jnp.float32)
    target_features = jax.random.normal(k_tgt, (N_QUERY, SEQ_LEN, DIM), jnp.float32)
    text_features_train = jax.random.normal(k_txt, (N_TEXT, DIM), jnp.float32)
    support_labels = jnp.array([0, 1], jnp.int32)
    support_real_class = jnp.array([1, 3], jnp.int32)

    ctx_params = make_context2_params(k_ctx, DIM, MLP_DIM, HEADS)

    out = clipfsar_forward(support_features, target_features, support_labels,
                           support_real_class, text_features_train, ctx_params,
                           scale=1.0, seq_len=SEQ_LEN)
    jax.block_until_ready(out['logits'])
    jax.block_until_ready(out['class_logits'])

    assert out['logits'].shape == (1, N_QUERY, 2)
    assert out['class_logits'].shape == (1, N_SUPPORT + N_QUERY, N_TEXT)
    assert bool(jnp.all(jnp.isfinite(out['logits'])))
    assert bool(jnp.all(jnp.isfinite(out['class_logits'])))
    print("KERNEL_OK")
</pallas_src>

<mosaic_0001>
module attributes {stable_mosaic.version = 11 : i64} {
  func.func @_cos_sim_kernel(%arg0: memref<4x64xf32, #tpu.memory_space<vmem>>, %arg1: memref<4x64xf32, #tpu.memory_space<vmem>>, %arg2: memref<4x4xf32, #tpu.memory_space<vmem>>) attributes {dimension_semantics = [], scalar_prefetch = 0 : i64, scratch_operands = 0 : i64, tpu.core_type = #tpu.core_type<tc>} {
    %c0 = arith.constant 0 : index
    %c0_0 = arith.constant 0 : index
    %0 = vector.load %arg0[%c0, %c0_0] : memref<4x64xf32, #tpu.memory_space<vmem>>, vector<4x64xf32>
    %c0_1 = arith.constant 0 : index
    %c0_2 = arith.constant 0 : index
    %1 = vector.load %arg1[%c0_1, %c0_2] : memref<4x64xf32, #tpu.memory_space<vmem>>, vector<4x64xf32>
    %cst = arith.constant dense<0.000000e+00> : vector<4x4xf32>
    %2 = tpu.matmul %0, %1, %cst {dimension_numbers = #tpu.dot_dimension_numbers<[1], [1], [0], [0], [0, 0, 1, 0], [], []>} : vector<4x64xf32>, vector<4x64xf32>, vector<4x4xf32> -> vector<4x4xf32>
    %3 = arith.mulf %0, %0 : vector<4x64xf32>
    %cst_3 = arith.constant dense<0.000000e+00> : vector<4xf32>
    %4 = vector.multi_reduction <add>, %3, %cst_3 [1] : vector<4x64xf32> to vector<4xf32>
    %5 = vector.shape_cast %4 : vector<4xf32> to vector<4x1xf32>
    %6 = math.sqrt %5 : vector<4x1xf32>
    %7 = arith.mulf %1, %1 : vector<4x64xf32>
    %cst_4 = arith.constant dense<0.000000e+00> : vector<4xf32>
    %8 = vector.multi_reduction <add>, %7, %cst_4 [1] : vector<4x64xf32> to vector<4xf32>
    %9 = vector.shape_cast %8 : vector<4xf32> to vector<4x1xf32>
    %10 = math.sqrt %9 : vector<4x1xf32>
    %11 = tpu.transpose %10, [1, 0] : vector<4x1xf32> -> vector<1x4xf32>
    %12 = vector.broadcast %6 : vector<4x1xf32> to vector<4x4xf32>
    %13 = vector.broadcast %11 : vector<1x4xf32> to vector<4x4xf32>
    %14 = arith.mulf %12, %13 : vector<4x4xf32>
    %cst_5 = arith.constant 0.00999999977 : f32
    %15 = vector.broadcast %cst_5 : f32 to vector<4x4xf32>
    %16 = arith.addf %14, %15 : vector<4x4xf32>
    %17 = tpu.reciprocal %16 {approx = true} : vector<4x4xf32> -> vector<4x4xf32>
    %18 = arith.mulf %2, %17 : vector<4x4xf32>
    %c0_6 = arith.constant 0 : index
    %c0_7 = arith.constant 0 : index
    %19 = vector.load %arg2[%c0_6, %c0_7] : memref<4x4xf32, #tpu.memory_space<vmem>>, vector<4x4xf32>
    tpu.vector_store %arg2[%c0_6, %c0_7], %18 {strides = array<i32>} : memref<4x4xf32, #tpu.memory_space<vmem>>, vector<4x4xf32>,
    return
  }
}

</mosaic_0001>

<bundles_post_ra>
// kernel: tpu_custom_call.1
= control target key start
LH: loop header
LB: loop body
LE: loop exit
PB: predicated region body
PF: predicated region fallthrough
CT: control target
= control target key end

     0   :  { %7 = vsyncpa [#allocation3], 0  ;;  %s344_s0 = inlined_call_operand.hbm [shape: f32[4,64], index: 0, kind: input, shape index: {}]   ;;  %s345_s1 = inlined_call_operand.hbm [shape: f32[4,64], index: 1, kind: input, shape index: {}]   ;;  %s346_s2 = inlined_call_operand.hbm [shape: f32[4,4], index: 2, kind: output, shape index: {}]  }
   0x1   :  { %8 = vsyncpa [#allocation6], 0 }
   0x2   :  { %9 = vsyncpa [#allocation4], 0  ;;  %s288_s9 = smov [#allocation2]   ;;  %s289_s11 = smov [#allocation5]  }
   0x3   :  { %s16_s10 = sshll.u32 %s288_s9, 4  ;;  %s26_s12 = sshll.u32 %s289_s11, 4  ;;  %s17_s10 = int_to_ptr.vmem [resolvable:$true] %s16_s10  ;;  %s27_s12 = int_to_ptr.vmem [resolvable:$true] %s26_s12 }
   0x4   :  { %s216_s15 = scalar_lea.hbm %s344_s0, 64 }
   0x5   :  { %p217_p0 = scmp.ne.s32.totalorder %s344_s0, %s216_s15  ;;  %p220_p1 = scmp.lt.u32.totalorder %s216_s15, %s344_s0 }
   0x7   :  { %p222_p2 = pnand %p220_p1, %p217_p0 }
   0x9   :  { %225 = shalt.err (!%p222_p2)
}
   0xa   :  { %s226_s20 = scalar_lea.vmem %s17_s10, 64  ;;  %p231_p4 = scmp.lt.s32.totalorder %s17_s10, %s17_s10 }
   0xb   :  { %p227_p3 = scmp.ne.s32.totalorder %s17_s10, %s226_s20  ;;  %p232_p5 = scmp.lt.s32.totalorder %s226_s20, %s226_s20 }
   0xd   :  { %p233_p6 = por %p232_p5, %p231_p4 }
   0xf   :  { %p234_p7 = pnand %p233_p6, %p227_p3 }
  0x11   :  { %237 = shalt.err (!%p234_p7)
}
  0x12   :  { %19 = dma.hbm_to_vmem [thread:$0]  %s344_s0, 64, %s17_s10, [#allocation3]  }
  0x13   :  { %s238_s25 = scalar_lea.hbm %s345_s1, 64 }
  0x14   :  { %p239_p8 = scmp.ne.s32.totalorder %s345_s1, %s238_s25  ;;  %p242_p9 = scmp.lt.u32.totalorder %s238_s25, %s345_s1 }
  0x16   :  { %p244_p10 = pnand %p242_p9, %p239_p8 }
  0x18   :  { %247 = shalt.err (!%p244_p10)
}
  0x19   :  { %s248_s30 = scalar_lea.vmem %s27_s12, 64  ;;  %p253_p12 = scmp.lt.s32.totalorder %s27_s12, %s27_s12 }
  0x1a   :  { %p249_p11 = scmp.ne.s32.totalorder %s27_s12, %s248_s30  ;;  %p254_p13 = scmp.lt.s32.totalorder %s248_s30, %s248_s30 }
  0x1c   :  { %p255_p0 = por %p254_p13, %p253_p12 }
  0x1e   :  { %p256_p1 = pnand %p255_p0, %p249_p11 }
  0x20   :  { %259 = shalt.err (!%p256_p1)
}
  0x21   :  { %29 = dma.hbm_to_vmem [thread:$0]  %s345_s1, 64, %s27_s12, [#allocation6]  }
  0x22   :  { %282 = dma.done.wait [#allocation3], 64  }
  0x23   :  { %283 = vsyncadd [#allocation3], 4294967232 }
  0x24   :  { %284 = dma.done.wait [#allocation6], 64  }
  0x25   :  { %285 = vsyncadd [#allocation6], 4294967232  ;;  %v290_v0 = vmov 0.0   ;;  %vm291_vm0 = vmmov 0   ;;  %vm38_vm1 = vcmask 523264   ;;  %vm116_vm2 = vcmask 519168  }
  0x26   :  { %200 = vmatprep.subr.mxu0 %v290_v0  ;;  %202 = vmatprep.mubr.msk.f32.mxu0 %vm291_vm0, %v290_v0  ;;  %v37_v1 = vld [vmem:[#allocation5] sm:$0xf]  ;;  %v36_v2 = vld [vmem:[#allocation2] sm:$0xf]  ;;  %v170_v16 = vlaneseq  ;;  %s292_s1 = smov [#allocation7]   ;;  %vm178_vm7 = vcmask 27648  }
  0x27   :  { %v127_v3 = vmul.f32 %v37_v1, %v37_v1  ;;  %201 = vmatpush3.xpose.msk.msra.mxu0 %vm38_vm1, %v37_v1  ;;  %v115_v4 = vmul.f32 %v36_v2, %v36_v2  ;;  %s186_s4 = sshll.u32 %s292_s1, 4  ;;  %s187_s4 = int_to_ptr.vmem [resolvable:$true] %s186_s4 }
  0x28   :  { %v171_v18 = vshrl.u32 %v170_v16, 7  ;;  %s260_s5 = scalar_lea.vmem %s187_s4, 64  ;;  %p265_p3 = scmp.lt.s32.totalorder %s187_s4, %s187_s4 }
  0x29   :  { %v128_v5 = vsel %vm116_vm2, %v127_v3, 0.0  ;;  %v117_v6 = vsel %vm116_vm2, %v115_v4, 0.0  ;;  %p261_p2 = scmp.ne.s32.totalorder %s187_s4, %s260_s5  ;;  %p266_p4 = scmp.lt.s32.totalorder %s260_s5, %s260_s5 }
  0x2a   :  { %129 = vadd.xlane.f32.xlu0 %v128_v5  ;;  %203 = vmatmul.mubr.msk.f32.vlgmr.msra.gmra.mrb[0].mxu0 %vm38_vm1, %v36_v2  ;;  %v172_v20 = vsub.s32 0, %v171_v18 }
  0x2b   :  { %p267_p5 = por %p266_p4, %p265_p3 }
  0x2d   :  { %p268_p6 = pnand %p267_p5, %p261_p2 }
  0x2e   :  { %118 = vadd.xlane.f32.xlu0 %v117_v6 }
  0xb7   :  { %v130_v7 = vpop.xlane.xlu0 %129 }
  0xb8   :  { %210 = vrsqrt.f32 %v130_v7  ;;  %vm133_vm3 = vcmp.eq.f32.partialorder %v130_v7, inf  ;;  %v136_v10 = vand.u32 2147483648, %v130_v7  ;;  %vm135_vm4 = vcmp.eq.f32.partialorder %v130_v7, 0.0 }
  0xbb   :  { %v119_v15 = vpop.xlane.xlu0 %118 }
  0xbc   :  { %212 = vrsqrt.f32 %v119_v15  ;;  %vm122_vm5 = vcmp.eq.f32.partialorder %v119_v15, inf  ;;  %v125_v21 = vand.u32 2147483648, %v119_v15  ;;  %vm124_vm6 = vcmp.eq.f32.partialorder %v119_v15, 0.0 }
  0xc2   :  { %v211_v8 = vpop.eup %210 }
  0xc3   :  { %v132_v9 = vmul.f32 %v211_v8, %v130_v7 }
  0xc5   :  { %v134_v11 = vsel %vm133_vm3, %v130_v7, %v132_v9 }
  0xc6   :  { %v137_v12 = vsel %vm135_vm4, %v136_v10, %v134_v11  ;;  %v213_v17 = vpop.eup %212 }
  0xc7   :  { %138 = vxpose.xlu1.b32.start.end [1/1] (short) (narrow) %v137_v12, 8  ;;  %v121_v19 = vmul.f32 %v213_v17, %v119_v15 }
  0xc9   :  { %v123_v22 = vsel %vm122_vm5, %v119_v15, %v121_v19 }
  0xca   :  { %v126_v25 = vsel %vm124_vm6, %v125_v21, %v123_v22 }
  0xfd   :  { %v111_v13 = vpop.f32.mrb[0].mxu0 }
  0xfe   :  { %v204_v14 = vpop.f32.mrb[1].mxu0 }
 0x147   :  { %v154_v23 = vpop.trf.xlu1 }
 0x148   :  { %v173_v24 = vrot.slane %v154_v23, %v172_v20 }
 0x14a   :  { %v174_v26 = vmul.f32 %v173_v24, %v126_v25 }
 0x14c   :  { %v175_v27 = vadd.f32 0.01, %v174_v26 }
 0x14e   :  { %214 = vrcp.f32 %v175_v27 }
 0x158   :  { %v215_v28 = vpop.eup %214 }
 0x159   :  { %v177_v29 = vmul.f32 %v215_v28, %v111_v13 }
 0x15b   :  { %179 = vst.msk [vmem:[#allocation7] sm:$0xf] %vm178_vm7, %v177_v29 }
 0x15c   :  { %271 = shalt.err (!%p268_p6)
}
 0x15d   :  { %s272_s8 = scalar_lea.hbm %s346_s2, 64 }
 0x15e   :  { %p273_p7 = scmp.ne.s32.totalorder %s346_s2, %s272_s8  ;;  %p276_p8 = scmp.lt.u32.totalorder %s272_s8, %s346_s2 }
 0x160   :  { %p278_p9 = pnand %p276_p8, %p273_p7 }
 0x162   :  { %281 = shalt.err (!%p278_p9)
}
 0x163   :  { %189 = dma.vmem_to_hbm [thread:$0]  %s187_s4, 64, %s346_s2, [#allocation4]  }
 0x164   :  { %286 = dma.done.wait [#allocation4], 64  }
 0x165   :  { %287 = vsyncadd [#allocation4], 4294967232 }
 0x166   :  { %193 = vsyncpa [#allocation3], 1 }
 0x167   :  { %194 = vsyncpa [#allocation6], 1 }
 0x168   :  { %195 = vsyncpa [#allocation4], 1 }

</bundles_post_ra>
